<compile_context>
chip_gen: v6e
topology: v6e:2x2x1
jax: 0.10.0
libtpu: 0.0.40
codegen_flags: <defaults>
</compile_context>

<pallas_src>
import functools

import jax
import jax.numpy as jnp
from jax.experimental import pallas as pl
from jax.experimental.pallas import tpu as pltpu

_SMOOTH = 1.0
_LANE = 128
_MAX_BLOCK_ROWS = 1024   # (1024, 128) f32 = 512 KiB per input block
_ROW_ALIGN = 16          # sublane alignment that works for both f32 (8) and bf16 (16)


def _round_up(v, m):
    return (v + m - 1) // m * m


def _partials_kernel(x_ref, y_ref, prod_ref, den_ref, *,
                     block_rows, valid_rows, needs_mask):
    """Per-block partial sums of (1-x)(1-y) and (1-x)+(1-y), shape (8, 128)."""
    x = x_ref[...].astype(jnp.float32)          # upcast (if bf16) on the VPU
    y = y_ref[...].astype(jnp.float32)
    ix = 1.0 - x
    it = 1.0 - y
    prod = ix * it                              # intersection terms
    den = ix + it                               # fused iflat.sum() + tflat.sum()

    if needs_mask:
        # Mask rows beyond the real array extent (Pallas pads the trailing
        # partial block with unspecified data).
        i = pl.program_id(0)
        row = jax.lax.broadcasted_iota(jnp.int32, (block_rows, 1), 0) + i * block_rows
        valid = row < valid_rows
        prod = jnp.where(valid, prod, 0.0)
        den = jnp.where(valid, den, 0.0)

    # Reduce (block_rows, 128) -> (8, 128) using only vector adds (no per-step
    # cross-lane reductions, no scalar SMEM read-modify-write chain).
    prod_ref[...] = prod.reshape(block_rows // 8, 8, _LANE).sum(axis=0)
    den_ref[...] = den.reshape(block_rows // 8, 8, _LANE).sum(axis=0)


def inv_soft_dice_loss(logits, targets, smooth=_SMOOTH):
    """Pallas implementation of InvSoftDiceLoss.forward (returns f32 scalar)."""
    x = logits.reshape(-1)
    y = targets.reshape(-1)

    # Keep f32/bf16 native (cast happens inside the kernel); anything else
    # (bool / int masks) is cast once here.
    if x.dtype not in (jnp.float32, jnp.bfloat16):
        x = x.astype(jnp.float32)
    if y.dtype not in (jnp.float32, jnp.bfloat16):
        y = y.astype(jnp.float32)

    n = x.shape[0]
    if n == 0:
        return jnp.float32(0.0)   # 1 - smooth/smooth

    # Minimal tail padding: only up to the 128-lane width (and to at least one
    # (16, 128) tile for tiny inputs).  Pad value 1.0 -> (1 - 1) = 0, so the
    # padding contributes nothing to any sum.
    padded_n = max(_round_up(n, _LANE), _ROW_ALIGN * _LANE)
    if padded_n != n:
        x = jnp.concatenate([x, jnp.ones((padded_n - n,), x.dtype)])
        y = jnp.concatenate([y, jnp.ones((padded_n - n,), y.dtype)])

    rows = padded_n // _LANE                       # >= 16
    x2 = x.reshape(rows, _LANE)
    y2 = y.reshape(rows, _LANE)

    # Block rows: largest multiple of 16 that is <= rows, capped at 1024.
    # Never exceeds the array, so only the standard trailing partial block
    # (handled by in-kernel masking) can occur.
    block_rows = min(_MAX_BLOCK_ROWS, _ROW_ALIGN * (rows // _ROW_ALIGN))
    nsteps = pl.cdiv(rows, block_rows)
    needs_mask = (rows % block_rows) != 0

    kernel = functools.partial(
        _partials_kernel,
        block_rows=block_rows,
        valid_rows=rows,
        needs_mask=needs_mask,
    )

    prod_parts, den_parts = pl.pallas_call(
        kernel,
        out_shape=(
            jax.ShapeDtypeStruct((nsteps, 8, _LANE), jnp.float32),
            jax.ShapeDtypeStruct((nsteps, 8, _LANE), jnp.float32),
        ),
        grid=(nsteps,),
        in_specs=[
            pl.BlockSpec((block_rows, _LANE), lambda i: (i, 0)),
            pl.BlockSpec((block_rows, _LANE), lambda i: (i, 0)),
        ],
        out_specs=(
            pl.BlockSpec((None, 8, _LANE), lambda i: (i, 0, 0)),
            pl.BlockSpec((None, 8, _LANE), lambda i: (i, 0, 0)),
        ),
        compiler_params=pltpu.CompilerParams(
            dimension_semantics=("parallel",)   # independent partials per block
        ),
    )(x2, y2)

    # Tiny final reduction + division (done once, outside the grid).
    intersection = jnp.sum(prod_parts)
    denom = jnp.sum(den_parts)
    return 1.0 - (2.0 * intersection + smooth) / (denom + smooth)


def _reference_loss(logits, targets, smooth=_SMOOTH):
    iflat = 1.0 - logits.reshape(-1).astype(jnp.float32)
    tflat = 1.0 - targets.reshape(-1).astype(jnp.float32)
    inter = jnp.sum(iflat * tflat)
    return 1.0 - (2.0 * inter + smooth) / (jnp.sum(iflat) + jnp.sum(tflat) + smooth)


if __name__ == "__main__":
    key = jax.random.PRNGKey(0)
    k1, k2, k3, k4 = jax.random.split(key, 4)

    # NCHW inputs, as the PyTorch module would receive (sigmoid probs + binary mask).
    logits = jax.nn.sigmoid(jax.random.normal(k1, (2, 4, 16, 16), jnp.float32))
    targets = (jax.random.uniform(k2, (2, 4, 16, 16)) > 0.5).astype(jnp.float32)

    loss = jax.block_until_ready(inv_soft_dice_loss(logits, targets))
    ref = _reference_loss(logits, targets)
    assert jnp.allclose(loss, ref, rtol=1e-5, atol=1e-5), (loss, ref)

    # Second check: ragged size (tail padding + in-kernel row masking of the
    # partial trailing block) and bf16 logits (native-dtype path).
    logits2 = jax.nn.sigmoid(
        jax.random.normal(k3, (2, 5, 20, 11), jnp.float32)).astype(jnp.bfloat16)
    targets2 = (jax.random.uniform(k4, (2, 5, 20, 11)) > 0.5).astype(jnp.float32)
    loss2 = jax.block_until_ready(inv_soft_dice_loss(logits2, targets2))
    ref2 = _reference_loss(logits2.astype(jnp.float32), targets2)
    assert jnp.allclose(loss2, ref2, rtol=1e-4, atol=1e-4), (loss2, ref2)

    print("KERNEL_OK")
</pallas_src>

<mosaic_0001>
module attributes {stable_mosaic.version = 11 : i64} {
  func.func @_partials_kernel(%arg0: i32, %arg1: memref<16x128xf32, #tpu.memory_space<vmem>>, %arg2: memref<16x128xf32, #tpu.memory_space<vmem>>, %arg3: memref<1x8x128xf32, #tpu.memory_space<vmem>>, %arg4: memref<1x8x128xf32, #tpu.memory_space<vmem>>) attributes {dimension_semantics = [#tpu.dimension_semantics<parallel>], iteration_bounds = array<i64: 1>, scalar_prefetch = 0 : i64, scratch_operands = 0 : i64, tpu.core_type = #tpu.core_type<tc>, window_params = [{transform_indices = @transform_0, window_bounds = array<i64: 16, 128>}, {transform_indices = @transform_1, window_bounds = array<i64: 16, 128>}, {transform_indices = @transform_2, window_bounds = array<i64: 1, 8, 128>}, {transform_indices = @transform_3, window_bounds = array<i64: 1, 8, 128>}]} {
    %c0 = arith.constant 0 : index
    %c0_0 = arith.constant 0 : index
    %0 = vector.load %arg1[%c0, %c0_0] : memref<16x128xf32, #tpu.memory_space<vmem>>, vector<16x128xf32>
    %c0_1 = arith.constant 0 : index
    %c0_2 = arith.constant 0 : index
    %1 = vector.load %arg2[%c0_1, %c0_2] : memref<16x128xf32, #tpu.memory_space<vmem>>, vector<16x128xf32>
    %cst = arith.constant 1.000000e+00 : f32
    %2 = vector.broadcast %cst : f32 to vector<16x128xf32>
    %3 = arith.subf %2, %0 : vector<16x128xf32>
    %cst_3 = arith.constant 1.000000e+00 : f32
    %4 = vector.broadcast %cst_3 : f32 to vector<16x128xf32>
    %5 = arith.subf %4, %1 : vector<16x128xf32>
    %6 = arith.mulf %3, %5 : vector<16x128xf32>
    %7 = arith.addf %3, %5 : vector<16x128xf32>
    %8 = vector.shape_cast %6 : vector<16x128xf32> to vector<2x8x128xf32>
    %cst_4 = arith.constant dense<0.000000e+00> : vector<8x128xf32>
    %9 = vector.multi_reduction <add>, %8, %cst_4 [0] : vector<2x8x128xf32> to vector<8x128xf32>
    %c0_5 = arith.constant 0 : index
    %c0_6 = arith.constant 0 : index
    %c0_7 = arith.constant 0 : index
    %10 = vector.load %arg3[%c0_5, %c0_6, %c0_7] : memref<1x8x128xf32, #tpu.memory_space<vmem>>, vector<1x8x128xf32>
    %11 = vector.shape_cast %10 : vector<1x8x128xf32> to vector<8x128xf32>
    %12 = vector.shape_cast %9 : vector<8x128xf32> to vector<1x8x128xf32>
    tpu.vector_store %arg3[%c0_5, %c0_6, %c0_7], %12 {strides = array<i32>} : memref<1x8x128xf32, #tpu.memory_space<vmem>>, vector<1x8x128xf32>,
    %13 = vector.shape_cast %7 : vector<16x128xf32> to vector<2x8x128xf32>
    %cst_8 = arith.constant dense<0.000000e+00> : vector<8x128xf32>
    %14 = vector.multi_reduction <add>, %13, %cst_8 [0] : vector<2x8x128xf32> to vector<8x128xf32>
    %c0_9 = arith.constant 0 : index
    %c0_10 = arith.constant 0 : index
    %c0_11 = arith.constant 0 : index
    %15 = vector.load %arg4[%c0_9, %c0_10, %c0_11] : memref<1x8x128xf32, #tpu.memory_space<vmem>>, vector<1x8x128xf32>
    %16 = vector.shape_cast %15 : vector<1x8x128xf32> to vector<8x128xf32>
    %17 = vector.shape_cast %14 : vector<8x128xf32> to vector<1x8x128xf32>
    tpu.vector_store %arg4[%c0_9, %c0_10, %c0_11], %17 {strides = array<i32>} : memref<1x8x128xf32, #tpu.memory_space<vmem>>, vector<1x8x128xf32>,
    return
  }
  func.func @transform_0(%arg0: i32) -> (i32, i32) {
    %c0_i32 = arith.constant 0 : i32
    %c0_i32_0 = arith.constant 0 : i32
    return %arg0, %c0_i32 : i32, i32
  }
  func.func @transform_1(%arg0: i32) -> (i32, i32) {
    %c0_i32 = arith.constant 0 : i32
    %c0_i32_0 = arith.constant 0 : i32
    return %arg0, %c0_i32 : i32, i32
  }
  func.func @transform_2(%arg0: i32) -> (i32, i32, i32) {
    %c0_i32 = arith.constant 0 : i32
    %c0_i32_0 = arith.constant 0 : i32
    %c0_i32_1 = arith.constant 0 : i32
    return %arg0, %c0_i32, %c0_i32_0 : i32, i32, i32
  }
  func.func @transform_3(%arg0: i32) -> (i32, i32, i32) {
    %c0_i32 = arith.constant 0 : i32
    %c0_i32_0 = arith.constant 0 : i32
    %c0_i32_1 = arith.constant 0 : i32
    return %arg0, %c0_i32, %c0_i32_0 : i32, i32, i32
  }
}

</mosaic_0001>

<bundles_post_ra>
// kernel: tpu_custom_call.1
= control target key start
LH: loop header
LB: loop body
LE: loop exit
PB: predicated region body
PF: predicated region fallthrough
CT: control target
= control target key end

     0   :  { %9 = vsyncpa [#allocation3], 0  ;;  %s221_s0 = inlined_call_operand.hbm [shape: f32[16,128], index: 0, kind: input, shape index: {}]   ;;  %s222_s1 = inlined_call_operand.hbm [shape: f32[16,128], index: 1, kind: input, shape index: {}]   ;;  %s223_s2 = inlined_call_operand.hbm [shape: f32[1,8,128], index: 2, kind: output, shape index: {0}]   ;;  %s224_s3 = inlined_call_operand.hbm [shape: f32[1,8,128], index: 3, kind: output, shape index: {1}]  }
   0x1   :  { %10 = vsyncpa [#allocation6], 0 }
   0x2   :  { %11 = vsyncpa [#allocation4], 0 }
   0x3   :  { %12 = vsyncpa [#allocation9], 0  ;;  %s183_s12 = smov [#allocation2]  }
   0x4   :  { %s18_s13 = sshll.u32 %s183_s12, 4  ;;  %s19_s13 = int_to_ptr.vmem [resolvable:$true] %s18_s13 }
   0x5   :  { %s103_s14 = scalar_lea.vmem %s19_s13, 256  ;;  %p108_p1 = scmp.lt.s32.totalorder %s19_s13, %s19_s13 }
   0x6   :  { %p104_p0 = scmp.ne.s32.totalorder %s19_s13, %s103_s14  ;;  %p109_p2 = scmp.lt.s32.totalorder %s103_s14, %s103_s14 }
   0x8   :  { %p110_p3 = por %p109_p2, %p108_p1 }
   0xa   :  { %p111_p4 = pnand %p110_p3, %p104_p0 }
   0xc   :  { %114 = shalt.err (!%p111_p4)
}
   0xd   :  { %s184_s15 = smov 128   ;;  %s185_s16 = smov 8  }
   0xe   :  { %24 = dma.hbm_to_vmem [thread:$0]  %s221_s0, 256, %s19_s13, [#allocation3], %s184_s15, %s184_s15, %s185_s16  }
   0xf   :  { %s186_s19 = smov [#allocation5]  }
  0x10   :  { %s30_s20 = sshll.u32 %s186_s19, 4  ;;  %s31_s20 = int_to_ptr.vmem [resolvable:$true] %s30_s20 }
  0x11   :  { %s123_s21 = scalar_lea.vmem %s31_s20, 256  ;;  %p128_p6 = scmp.lt.s32.totalorder %s31_s20, %s31_s20 }
  0x12   :  { %p124_p5 = scmp.ne.s32.totalorder %s31_s20, %s123_s21  ;;  %p129_p7 = scmp.lt.s32.totalorder %s123_s21, %s123_s21 }
  0x14   :  { %p130_p8 = por %p129_p7, %p128_p6 }
  0x16   :  { %p131_p9 = pnand %p130_p8, %p124_p5 }
  0x18   :  { %134 = shalt.err (!%p131_p9)
}
  0x19   :  { %36 = dma.hbm_to_vmem [thread:$0]  %s222_s1, 256, %s31_s20, [#allocation6], %s184_s15, %s184_s15, %s185_s16  }
  0x1a   :  { %175 = dma.done.wait [#allocation3], 256  }
  0x1b   :  { %176 = vsyncadd [#allocation3], 4294967040 }
  0x1c   :  { %177 = dma.done.wait [#allocation6], 256  }
  0x1d   :  { %178 = vsyncadd [#allocation6], 4294967040  ;;  %v43_v0 = vld [vmem:[#allocation2] sm:$0xff]  ;;  %v44_v1 = vld [vmem:[#allocation2 + $0x8] sm:$0xff]  ;;  %s187_s0 = smov [#allocation7]   ;;  %s188_s25 = smov [#allocation8]  }
  0x1e   :  { %v45_v2 = vld [vmem:[#allocation5] sm:$0xff]  ;;  %v46_v3 = vld [vmem:[#allocation5 + $0x8] sm:$0xff]  ;;  %v47_v4 = vsub.f32 1.0, %v43_v0  ;;  %v48_v5 = vsub.f32 1.0, %v44_v1  ;;  %s65_s24 = sshll.u32 %s187_s0, 4  ;;  %s75_s1 = sshll.u32 %s188_s25, 4  ;;  %s66_s24 = int_to_ptr.vmem [resolvable:$true] %s65_s24  ;;  %s76_s1 = int_to_ptr.vmem [resolvable:$true] %s75_s1 }
  0x1f   :  { %v49_v6 = vsub.f32 1.0, %v45_v2  ;;  %v50_v7 = vsub.f32 1.0, %v46_v3  ;;  %s135_s26 = scalar_lea.vmem %s66_s24, 128  ;;  %p140_p11 = scmp.lt.s32.totalorder %s66_s24, %s66_s24 }
  0x20   :  { %p136_p10 = scmp.ne.s32.totalorder %s66_s24, %s135_s26  ;;  %p141_p12 = scmp.lt.s32.totalorder %s135_s26, %s135_s26 }
  0x21   :  { %v51_v8 = vmul.f32 %v49_v6, %v47_v4  ;;  %v53_v9 = vadd.f32 %v49_v6, %v47_v4  ;;  %v52_v10 = vmul.f32 %v50_v7, %v48_v5  ;;  %v54_v11 = vadd.f32 %v50_v7, %v48_v5 }
  0x22   :  { %p142_p13 = por %p141_p12, %p140_p11 }
  0x23   :  { %v55_v12 = vadd.f32 %v52_v10, %v51_v8  ;;  %v57_v13 = vadd.f32 %v54_v11, %v53_v9 }
  0x24   :  { %p143_p0 = pnand %p142_p13, %p136_p10 }
  0x25   :  { %56 = vst [vmem:[#allocation7] sm:$0xff] %v55_v12  ;;  %58 = vst [vmem:[#allocation8] sm:$0xff] %v57_v13 }
  0x26   :  { %146 = shalt.err (!%p143_p0)
}
  0x27   :  { %68 = dma.vmem_to_hbm [thread:$0]  %s66_s24, 128, %s223_s2, [#allocation4]  }
  0x28   :  { %s155_s29 = scalar_lea.vmem %s76_s1, 128  ;;  %p160_p2 = scmp.lt.s32.totalorder %s76_s1, %s76_s1 }
  0x29   :  { %p156_p1 = scmp.ne.s32.totalorder %s76_s1, %s155_s29  ;;  %p161_p3 = scmp.lt.s32.totalorder %s155_s29, %s155_s29 }
  0x2b   :  { %p162_p4 = por %p161_p3, %p160_p2 }
  0x2d   :  { %p163_p5 = pnand %p162_p4, %p156_p1 }
  0x2f   :  { %166 = shalt.err (!%p163_p5)
}
  0x30   :  { %78 = dma.vmem_to_hbm [thread:$0]  %s76_s1, 128, %s224_s3, [#allocation9]  }
  0x31   :  { %179 = dma.done.wait [#allocation4], 128  }
  0x32   :  { %180 = vsyncadd [#allocation4], 4294967168 }
  0x33   :  { %181 = dma.done.wait [#allocation9], 128  }
  0x34   :  { %182 = vsyncadd [#allocation9], 4294967168 }
  0x35   :  { %85 = vsyncpa [#allocation3], 1 }
  0x36   :  { %86 = vsyncpa [#allocation6], 1 }
  0x37   :  { %87 = vsyncpa [#allocation4], 1 }
  0x38   :  { %88 = vsyncpa [#allocation9], 1 }

</bundles_post_ra>
